<compile_context>
chip_gen: v7x
topology: tpu7x:2x2x1
jax: 0.10.0
libtpu: 0.0.40
codegen_flags: <defaults>
</compile_context>

<pallas_src>
import functools

import numpy as np
import jax
import jax.numpy as jnp
from jax.experimental import pallas as pl
from jax.experimental.pallas import tpu as pltpu


def _round_up(a: int, b: int) -> int:
    return (a + b - 1) // b * b


def _cdiv(a: int, b: int) -> int:
    return -(-a // b)


def _wscale_conv_kernel(Wp, KH, KW, TM, ITERS, BM, WIDE,
                        x_ref, w_ref, b_ref, o_ref):
    """Fused conv (wscale folded into weights) + bias for one (image, block).

    x_ref: (1, Cin_pad, L_pad)        zero-padded image, spatial flattened (bf16)
    w_ref: (KH, Cout, KW*Cin_pad)     per-kh folded weights, wscale applied (bf16)
    b_ref: (Cout, 1)                  per-output-channel bias (f32)
    o_ref: (1, Cout, BM)              flat output block with row stride Wp
    """
    cout = o_ref.shape[1]
    g = pl.program_id(1)

    # Bias broadcast hoisted out of the tile loop and used as the accumulator
    # initializer (JAX does not CSE broadcast_in_dim).
    bias_tile = jnp.broadcast_to(b_ref[...], (cout, TM))

    for t in range(ITERS):                      # bounded static unroll (<= 4)
        # 128-aligned dynamic base of this tile along the flat spatial axis.
        base = pl.multiple_of(g * BM + t * TM, 128)
        # One wide load covering the tile plus the (KH-1)*Wp + KW-1 halo;
        # every per-tap shift below is a *static* lane slice of this value.
        wide = x_ref[0, :, pl.ds(base, WIDE)]   # (Cin_pad, WIDE) bf16

        acc = bias_tile                         # f32 (Cout, TM)
        for kh in range(KH):
            row = kh * Wp
            if KW == 1:
                patch = wide[:, row:row + TM]
            else:
                # Tile-aligned sublane concat (each piece has Cin_pad % 16 == 0
                # rows) -> (KW*Cin_pad, TM) operand for one fat matmul.
                patch = jnp.concatenate(
                    [wide[:, row + kw: row + kw + TM] for kw in range(KW)],
                    axis=0)
            acc = acc + jnp.dot(w_ref[kh], patch,
                                preferred_element_type=jnp.float32)

        # Lane-dense, statically-aligned store (TM is a multiple of 128).
        o_ref[0, :, t * TM:(t + 1) * TM] = acc.astype(o_ref.dtype)


@functools.partial(jax.jit, static_argnames=("padding", "gain", "tm_max"))
def wscale_conv2d(x, weight, bias, *, padding=0, gain=float(np.sqrt(2.0)),
                  tm_max=1024):
    """Equivalent of WScaleConv2d(in, out, k, padding, bias=True, gain).forward(x).

    out = conv2d(x, weight, stride=1, padding) * (gain / sqrt(Cin*KH*KW)) + bias

    x:      (N, Cin, H, W) NCHW
    weight: (Cout, Cin, KH, KW)
    bias:   (Cout,) or None  (None == bias=False in the module)
    Compute contract: bf16 streaming with f32 accumulation.
    """
    N, Cin, H, W = x.shape
    Cout, Cin_w, KH, KW = weight.shape
    assert Cin_w == Cin, "weight/input channel mismatch"
    p = int(padding)
    assert p >= 0, "padding must be non-negative"

    fan_in = Cin * KH * KW
    scale = float(gain) / float(np.sqrt(fan_in))

    Hp, Wp = H + 2 * p, W + 2 * p
    Ho, Wo = Hp - KH + 1, Wp - KW + 1
    # Stride-1 geometry assumptions of the static-shift trick: fail loudly.
    assert Ho >= 1 and Wo >= 1 and KH <= Hp and KW <= Wp, \
        "degenerate stride-1 conv geometry"

    compute_dtype = jnp.bfloat16
    # Pad Cin to the bf16 sublane tile so the in-kernel tap concat is aligned.
    SUB = 16
    Cin_p = _round_up(Cin, SUB)

    # ---- spatial tiling ------------------------------------------------------
    Mi = Ho * Wp                               # flat output positions / image
    ACC_BUDGET = 64 * 1024                     # f32 accumulator vreg budget
    PATCH_BUDGET = 64 * 1024                   # bf16 patch vreg budget
    tm = min(_round_up(Mi, 128),
             int(tm_max),
             max(1, ACC_BUDGET // (4 * Cout)),
             max(1, PATCH_BUDGET // (2 * KW * Cin_p)))
    TM = max(128, (tm // 128) * 128)           # lane-dense tile (mult of 128)
    MT = _cdiv(Mi, TM)                         # tiles per image
    ITERS = min(4, MT)                         # tiles per grid step
    G = _cdiv(MT, ITERS)                       # spatial grid blocks per image
    ITERS = _cdiv(MT, G)                       # rebalance (minimize tail pad)
    BM = ITERS * TM
    Mi_pad = G * BM

    HALO = (KH - 1) * Wp + (KW - 1)
    WIDE = TM + _round_up(HALO, 128)           # wide-load width (tile + halo)
    L_need = Mi_pad + (WIDE - TM)              # max flat index touched (excl.)
    extra_rows = _cdiv(max(0, L_need - Hp * Wp), Wp)
    Hpp = Hp + extra_rows
    L_pad = Hpp * Wp

    # ---- glue: ONE fused pad (channels + spatial + bottom halo rows), flatten
    xq = jnp.pad(x.astype(compute_dtype),
                 ((0, 0), (0, Cin_p - Cin), (p, p + extra_rows), (p, p)))
    xf = xq.reshape(N, Cin_p, L_pad)

    # Per-kh folded weights (KH, Cout, KW*Cin_p), wscale folded in (tiny array).
    w = (weight.astype(jnp.float32) * scale).transpose(2, 3, 0, 1)  # (KH,KW,Cout,Cin)
    w = jnp.pad(w, ((0, 0), (0, 0), (0, 0), (0, Cin_p - Cin)))
    w = w.transpose(0, 2, 1, 3).reshape(KH, Cout, KW * Cin_p).astype(compute_dtype)

    if bias is None:
        b2 = jnp.zeros((Cout, 1), jnp.float32)
    else:
        b2 = bias.reshape(Cout, 1).astype(jnp.float32)

    # Scoped-VMEM limit from the double-buffered block footprint (+ headroom).
    footprint = (2 * Cin_p * L_pad * 2            # input block (bf16), 2 bufs
                 + 2 * KH * Cout * KW * Cin_p * 2  # weights (bf16)
                 + 2 * _round_up(Cout, 8) * 128 * 4  # bias (f32, padded tile)
                 + 2 * Cout * BM * 2)              # output block (bf16)
    vmem_limit = int(min(96 * 2**20,
                         max(32 * 2**20, int(1.5 * footprint) + (2 << 20))))

    kernel = functools.partial(_wscale_conv_kernel, Wp, KH, KW, TM, ITERS, BM, WIDE)
    out_flat = pl.pallas_call(
        kernel,
        out_shape=jax.ShapeDtypeStruct((N, Cout, Mi_pad), compute_dtype),
        grid=(N, G),
        in_specs=[
            pl.BlockSpec((1, Cin_p, L_pad), lambda n, g: (n, 0, 0)),
            pl.BlockSpec((KH, Cout, KW * Cin_p), lambda n, g: (0, 0, 0)),
            pl.BlockSpec((Cout, 1), lambda n, g: (0, 0)),
        ],
        out_specs=pl.BlockSpec((1, Cout, BM), lambda n, g: (n, 0, g)),
        compiler_params=pltpu.CompilerParams(
            dimension_semantics=("parallel", "parallel"),
            vmem_limit_bytes=vmem_limit),
    )(xf, w, b2)

    # Channel-major flat output is already NCHW order: one epilogue copy strips
    # the tail pad + the KW-1 junk columns per row AND casts back to x.dtype.
    out = out_flat[:, :, :Ho * Wp].reshape(N, Cout, Ho, Wp)[:, :, :, :Wo]
    return out.astype(x.dtype)


def _reference(x, weight, bias, padding, gain):
    scale = float(gain) / np.sqrt(weight.shape[1] * weight.shape[2] * weight.shape[3])
    ref = jax.lax.conv_general_dilated(
        x, weight, window_strides=(1, 1),
        padding=((padding, padding), (padding, padding)),
        dimension_numbers=("NCHW", "OIHW", "NCHW"))
    return ref * scale + bias.reshape(1, -1, 1, 1)


if __name__ == "__main__":
    gain = float(np.sqrt(2.0))
    key = jax.random.PRNGKey(0)
    k1, k2, k3, k4, k5, k6 = jax.random.split(key, 6)

    # ---- Test 1: module-sized demo (Cin=4 -> channel-padded path, G=1) ------
    in_ch, out_ch, ksz, pad = 4, 8, 3, 1
    x = jax.random.normal(k1, (2, in_ch, 16, 16), dtype=jnp.float32)
    weight = jax.random.normal(k2, (out_ch, in_ch, ksz, ksz), dtype=jnp.float32)
    bias = jax.random.normal(k3, (out_ch,), dtype=jnp.float32)

    out = jax.block_until_ready(wscale_conv2d(x, weight, bias, padding=pad, gain=gain))
    ref = _reference(x, weight, bias, pad, gain)
    assert out.shape == ref.shape == (2, out_ch, 16, 16)
    # bf16 streaming with f32 accumulation -> loose comparison vs f32 reference.
    assert np.allclose(np.asarray(out), np.asarray(ref), atol=5e-2, rtol=5e-2)

    # ---- Test 2: multi-block grid + multi-tile inner loop (aligned Cin) -----
    in2, out2, pad2 = 16, 32, 1
    x2 = jax.random.normal(k4, (1, in2, 64, 64), dtype=jnp.float32)
    w2 = jax.random.normal(k5, (out2, in2, 3, 3), dtype=jnp.float32)
    b2 = jax.random.normal(k6, (out2,), dtype=jnp.float32)

    out2_arr = jax.block_until_ready(wscale_conv2d(x2, w2, b2, padding=pad2, gain=gain))
    ref2 = _reference(x2, w2, b2, pad2, gain)
    assert out2_arr.shape == ref2.shape == (1, out2, 64, 64)
    assert np.allclose(np.asarray(out2_arr), np.asarray(ref2), atol=6e-2, rtol=6e-2)

    print("KERNEL_OK")
</pallas_src>

<mosaic_0001>
module attributes {stable_mosaic.version = 11 : i64} {
  func.func @_wscale_conv_kernel(%arg0: i32, %arg1: i32, %arg2: memref<1x16x522xbf16, #tpu.memory_space<vmem>>, %arg3: memref<3x8x48xbf16, #tpu.memory_space<vmem>>, %arg4: memref<8x1xf32, #tpu.memory_space<vmem>>, %arg5: memref<1x8x384xbf16, #tpu.memory_space<vmem>>) attributes {dimension_semantics = [#tpu.dimension_semantics<parallel>, #tpu.dimension_semantics<parallel>], iteration_bounds = array<i64: 2, 1>, scalar_prefetch = 0 : i64, scratch_operands = 0 : i64, tpu.core_type = #tpu.core_type<tc>, window_params = [{transform_indices = @transform_0, window_bounds = array<i64: 1, 16, 522>}, {pipeline_mode = #tpu.pipeline_mode<synchronous>, transform_indices = @transform_1, window_bounds = array<i64: 3, 8, 48>}, {pipeline_mode = #tpu.pipeline_mode<synchronous>, transform_indices = @transform_2, window_bounds = array<i64: 8, 1>}, {transform_indices = @transform_3, window_bounds = array<i64: 1, 8, 384>}]} {
    %c0 = arith.constant 0 : index
    %c0_0 = arith.constant 0 : index
    %0 = vector.load %arg4[%c0, %c0_0] : memref<8x1xf32, #tpu.memory_space<vmem>>, vector<8x1xf32>
    %1 = vector.shape_cast %0 : vector<8x1xf32> to vector<8x1xf32>
    %2 = vector.broadcast %1 : vector<8x1xf32> to vector<8x384xf32>
    %c384_i32 = arith.constant 384 : i32
    %3 = arith.muli %arg1, %c384_i32 : i32
    %c0_i32 = arith.constant 0 : i32
    %4 = arith.addi %3, %c0_i32 : i32
    %5 = tpu.assume_multiple %4, 128 : i32
    %c0_1 = arith.constant 0 : index
    %c0_2 = arith.constant 0 : index
    %6 = arith.index_cast %5 : i32 to index
    %7 = vector.load %arg2[%c0_1, %c0_2, %6] : memref<1x16x522xbf16, #tpu.memory_space<vmem>>, vector<1x16x512xbf16>
    %8 = vector.shape_cast %7 : vector<1x16x512xbf16> to vector<16x512xbf16>
    %9 = vector.extract_strided_slice %8 {offsets = [0, 0], sizes = [16, 384], strides = [1, 1]} : vector<16x512xbf16> to vector<16x384xbf16>
    %10 = vector.extract_strided_slice %8 {offsets = [0, 1], sizes = [16, 384], strides = [1, 1]} : vector<16x512xbf16> to vector<16x384xbf16>
    %11 = vector.extract_strided_slice %8 {offsets = [0, 2], sizes = [16, 384], strides = [1, 1]} : vector<16x512xbf16> to vector<16x384xbf16>
    %12 = tpu.concatenate %9, %10, %11 in 0 : vector<16x384xbf16>, vector<16x384xbf16>, vector<16x384xbf16> -> vector<48x384xbf16>
    %c0_3 = arith.constant 0 : index
    %c0_4 = arith.constant 0 : index
    %c0_5 = arith.constant 0 : index
    %13 = vector.load %arg3[%c0_3, %c0_4, %c0_5] : memref<3x8x48xbf16, #tpu.memory_space<vmem>>, vector<1x8x48xbf16>
    %14 = vector.shape_cast %13 : vector<1x8x48xbf16> to vector<8x48xbf16>
    %cst = arith.constant dense<0.000000e+00> : vector<8x384xf32>
    %15 = tpu.matmul %14, %12, %cst {dimension_numbers = #tpu.dot_dimension_numbers<[1], [0], [0], [1], [0, 0, 1, 1], [], []>} : vector<8x48xbf16>, vector<48x384xbf16>, vector<8x384xf32> -> vector<8x384xf32>
    %16 = arith.addf %2, %15 : vector<8x384xf32>
    %17 = vector.extract_strided_slice %8 {offsets = [0, 18], sizes = [16, 384], strides = [1, 1]} : vector<16x512xbf16> to vector<16x384xbf16>
    %18 = vector.extract_strided_slice %8 {offsets = [0, 19], sizes = [16, 384], strides = [1, 1]} : vector<16x512xbf16> to vector<16x384xbf16>
    %19 = vector.extract_strided_slice %8 {offsets = [0, 20], sizes = [16, 384], strides = [1, 1]} : vector<16x512xbf16> to vector<16x384xbf16>
    %20 = tpu.concatenate %17, %18, %19 in 0 : vector<16x384xbf16>, vector<16x384xbf16>, vector<16x384xbf16> -> vector<48x384xbf16>
    %c1 = arith.constant 1 : index
    %c0_6 = arith.constant 0 : index
    %c0_7 = arith.constant 0 : index
    %21 = vector.load %arg3[%c1, %c0_6, %c0_7] : memref<3x8x48xbf16, #tpu.memory_space<vmem>>, vector<1x8x48xbf16>
    %22 = vector.shape_cast %21 : vector<1x8x48xbf16> to vector<8x48xbf16>
    %cst_8 = arith.constant dense<0.000000e+00> : vector<8x384xf32>
    %23 = tpu.matmul %22, %20, %cst_8 {dimension_numbers = #tpu.dot_dimension_numbers<[1], [0], [0], [1], [0, 0, 1, 1], [], []>} : vector<8x48xbf16>, vector<48x384xbf16>, vector<8x384xf32> -> vector<8x384xf32>
    %24 = arith.addf %16, %23 : vector<8x384xf32>
    %25 = vector.extract_strided_slice %8 {offsets = [0, 36], sizes = [16, 384], strides = [1, 1]} : vector<16x512xbf16> to vector<16x384xbf16>
    %26 = vector.extract_strided_slice %8 {offsets = [0, 37], sizes = [16, 384], strides = [1, 1]} : vector<16x512xbf16> to vector<16x384xbf16>
    %27 = vector.extract_strided_slice %8 {offsets = [0, 38], sizes = [16, 384], strides = [1, 1]} : vector<16x512xbf16> to vector<16x384xbf16>
    %28 = tpu.concatenate %25, %26, %27 in 0 : vector<16x384xbf16>, vector<16x384xbf16>, vector<16x384xbf16> -> vector<48x384xbf16>
    %c2 = arith.constant 2 : index
    %c0_9 = arith.constant 0 : index
    %c0_10 = arith.constant 0 : index
    %29 = vector.load %arg3[%c2, %c0_9, %c0_10] : memref<3x8x48xbf16, #tpu.memory_space<vmem>>, vector<1x8x48xbf16>
    %30 = vector.shape_cast %29 : vector<1x8x48xbf16> to vector<8x48xbf16>
    %cst_11 = arith.constant dense<0.000000e+00> : vector<8x384xf32>
    %31 = tpu.matmul %30, %28, %cst_11 {dimension_numbers = #tpu.dot_dimension_numbers<[1], [0], [0], [1], [0, 0, 1, 1], [], []>} : vector<8x48xbf16>, vector<48x384xbf16>, vector<8x384xf32> -> vector<8x384xf32>
    %32 = arith.addf %24, %31 : vector<8x384xf32>
    %33 = arith.truncf %32 : vector<8x384xf32> to vector<8x384xbf16>
    %c0_12 = arith.constant 0 : index
    %c0_13 = arith.constant 0 : index
    %c0_14 = arith.constant 0 : index
    %34 = vector.load %arg5[%c0_12, %c0_13, %c0_14] : memref<1x8x384xbf16, #tpu.memory_space<vmem>>, vector<1x8x384xbf16>
    %35 = vector.shape_cast %34 : vector<1x8x384xbf16> to vector<8x384xbf16>
    %36 = vector.shape_cast %33 : vector<8x384xbf16> to vector<1x8x384xbf16>
    tpu.vector_store %arg5[%c0_12, %c0_13, %c0_14], %36 {strides = array<i32>} : memref<1x8x384xbf16, #tpu.memory_space<vmem>>, vector<1x8x384xbf16>,
    return
  }
  func.func @transform_0(%arg0: i32, %arg1: i32) -> (i32, i32, i32) {
    %c0_i32 = arith.constant 0 : i32
    %c0_i32_0 = arith.constant 0 : i32
    %c0_i32_1 = arith.constant 0 : i32
    return %arg0, %c0_i32, %c0_i32_0 : i32, i32, i32
  }
  func.func @transform_1(%arg0: i32, %arg1: i32) -> (i32, i32, i32) {
    %c0_i32 = arith.constant 0 : i32
    %c0_i32_0 = arith.constant 0 : i32
    %c0_i32_1 = arith.constant 0 : i32
    %c0_i32_2 = arith.constant 0 : i32
    return %c0_i32, %c0_i32_0, %c0_i32_1 : i32, i32, i32
  }
  func.func @transform_2(%arg0: i32, %arg1: i32) -> (i32, i32) {
    %c0_i32 = arith.constant 0 : i32
    %c0_i32_0 = arith.constant 0 : i32
    %c0_i32_1 = arith.constant 0 : i32
    return %c0_i32, %c0_i32_0 : i32, i32
  }
  func.func @transform_3(%arg0: i32, %arg1: i32) -> (i32, i32, i32) {
    %c0_i32 = arith.constant 0 : i32
    %c0_i32_0 = arith.constant 0 : i32
    return %arg0, %c0_i32, %arg1 : i32, i32, i32
  }
}

</mosaic_0001>

<bundles_post_ra>
// kernel: wscale_conv2d.1
= control target key start
LH: loop header
LB: loop body
LE: loop exit
PB: predicated region body
PF: predicated region fallthrough
CT: control target
= control target key end

     0   :  { %s887_s12 = smov 0   ;;  %s889_s13 = smov 0   ;;  %s1003_s0 = inlined_call_operand.vmem [shape: bf16[2,16,522], index: 0, kind: input, shape index: {}]   ;;  %s1004_s1 = inlined_call_operand.vmem [shape: bf16[3,8,48], index: 1, kind: input, shape index: {}]   ;;  %s1005_s2 = inlined_call_operand.vmem [shape: f32[8,1], index: 2, kind: input, shape index: {}]   ;;  %s1006_s3 = inlined_call_operand.vmem [shape: bf16[2,8,384], index: 3, kind: output, shape index: {}]  }
   0x1   :  { %s891_s14 = smov 0  }
   0x2 LB: > { %s25_s15 = sadd.s32 1, %s854_s13  ;;  %p714_p0 = scmp.ge.s32.totalorder %s858_s14, 1  ;;  %s858_s14 = sphi %s891_s14, %s13_s14   ;;  %s854_s13 = sphi %s889_s13, %s1008_s13   ;;  %s850_s12 = sphi %s887_s12, %s1007_s12  }
   0x3   : > { %p27_p1 = scmp.ge.s32.totalorder %s25_s15, 2  ;;  %p151_p2 = scmp.lt.s32.totalorder %s858_s14, 3 }
   0x5   : > { %s1010_s15 = smov (%p27_p1, %s25_s15), 0  ;;  %p152_p3 = pnand %p714_p0, %p151_p2 }
   0x6   : > { %p179_p4 = scmp.lt.s32.totalorder (!%p152_p3), %s850_s12, 1  ;;  %v860_v0 = vmov (!%p152_p3), 0.0   ;;  %s861_s20 = smov (!%p152_p3), 127   ;;  %v865_v5 = vmov (!%p152_p3), 0   ;;  %vm866_vm0 = vmmov (!%p152_p3), 0   ;;  %vm237_vm1 = vcmask (!%p152_p3), 1039360  }
   0x7   : > { %155 = sbr.rel (%p152_p3) target bundleno = 507 (0x1fb), region = 32  ;;  %747 = vmatprep.subr.bf16.mxu1 (!%p152_p3), %v860_v0  ;;  %s862_s21 = smov (!%p152_p3), 126   ;;  %296 = vmatprep.mubr.bf16.mxu0 (!%p152_p3), %v865_v5  ;;  %vm252_vm2 = vcmask (!%p152_p3), 1031168   ;;  %v259_v19 = vld [vmem:[%s1004_s1] sm:$0xf] (!%p152_p3)  ;;  %vm260_vm3 = vcmask (!%p152_p3), 392192  }
   0x8   : > { %s863_s22 = smov (!%p152_p3), 110   ;;  %s864_s23 = smov (!%p152_p3), 92   ;;  %753 = vmatprep.mubr.msk.bf16.mxu1 (!%p152_p3), %vm866_vm0, %v860_v0  ;;  %829 = vset.pattern.permute.xlu0 (!%p152_p3), %v865_v5  ;;  %vm374_vm4 = vcmask (!%p152_p3), 900096   ;;  %v195_v28 = vld [vmem:[%s1005_s2] sm:$0xff] (!%p152_p3)  ;;  %vm506_vm5 = vcmask (!%p152_p3), 752640  }
   0x9   : > { %v723_v48 = vld [vmem:[%s1004_s1 + $0x4] sm:$0xf] (!%p152_p3)  ;;  %v726_v63 = vld [vmem:[%s1004_s1 + $0x8] sm:$0xf] (!%p152_p3) }
   0xe   : > { %s1012_s12 = smov (!%p179_p4, %s850_s12), 1 }
   0xf   : > { %s796_s16 = smul.u32 40, %s1012_s12 }
  0x10   : > { %s797_s5 = smul.u32 12, %s1012_s12 }
  0x11   : > { %s183_s19 = scalar_lea.vmem %s1003_s0, %s796_s16 }
  0x12   : > { %v830_v1 = vld [vmem:[%s183_s19 + $0xc] ss:$20 sps:$4 sm:$0xff]   ;;  %v832_v2 = vld [vmem:[%s183_s19 + $0x8] ss:$20 sps:$4 sm:$0xff]   ;;  %v833_v3 = vld [vmem:[%s183_s19 + $0x4] ss:$20 sps:$4 sm:$0xff]   ;;  %s192_s8 = scalar_lea.vmem %s1006_s3, %s797_s5 }
  0x13   : > { %235 = vrot.lane.b32.xlu1 %v830_v1, %s861_s20  ;;  %v835_v4 = vld [vmem:[%s183_s19] ss:$20 sps:$4 sm:$0xff]   ;;  %748 = vmatpush3.bf16.msra.mxu1 %v832_v2 }
  0x14   : > { %231 = vrot.lane.b32.xlu0 %v833_v3, %s861_s20  ;;  %264 = vmatprep.subr.bf16.mxu0 %v833_v3 }
  0x15   : > { %265 = vmatpush1.bf16.msra.mxu0 %v835_v4  ;;  %749 = vmatprep.subr.bf16.mxu1 %v860_v0 }
  0x17   : > { %229 = vrot.lane.b32.xlu1 %v835_v4, %s861_s20 }
  0x18   : > { %233 = vrot.lane.b32.xlu0 %v832_v2, %s861_s20 }
  0x1b   : > { %248 = vrot.lane.b32.xlu1 %v832_v2, %s862_s21 }
  0x1c   : > { %246 = vrot.lane.b32.xlu0 %v833_v3, %s862_s21 }
  0x1f   : > { %244 = vrot.lane.b32.xlu1 %v835_v4, %s862_s21 }
  0x20   : > { %250 = vrot.lane.b32.xlu0 %v830_v1, %s862_s21 }
  0x23   : > { %354 = vrot.lane.b32.xlu1 %v832_v2, %s863_s22 }
  0x24   : > { %352 = vrot.lane.b32.xlu0 %v833_v3, %s863_s22 }
  0x27   : > { %356 = vrot.lane.b32.xlu1 %v830_v1, %s863_s22 }
  0x28   : > { %350 = vrot.lane.b32.xlu0 %v835_v4, %s863_s22 }
  0x2b   : > { %486 = vrot.lane.b32.xlu1 %v832_v2, %s864_s23 }
  0x2c   : > { %484 = vrot.lane.b32.xlu0 %v833_v3, %s864_s23 }
  0x2f   : > { %488 = vrot.lane.b32.xlu1 %v830_v1, %s864_s23 }
  0x30   : > { %482 = vrot.lane.b32.xlu0 %v835_v4, %s864_s23 }
  0x85   : > { %v236_v6 = vpop.permute.xlu1 %235 }
  0x86   : > { %364 = vrot.lane.b32.xlu1 %v236_v6, %s863_s22  ;;  %v232_v7 = vpop.permute.xlu0 %231 }
  0x89   : > { %v230_v8 = vpop.permute.xlu1 %229 }
  0x8a   : > { %v234_v9 = vpop.permute.xlu0 %233  ;;  %v238_v12 = vsel %vm237_vm1, %v230_v8, %v232_v7 }
  0x8b   : > { %v240_v10 = vsel %vm237_vm1, %v234_v9, %v236_v6  ;;  %v239_v11 = vsel %vm237_vm1, %v232_v7, %v234_v9 }
  0x8c   : > { %750 = vmatpush3.bf16.msra.mxu1 %v240_v10  ;;  %360 = vrot.lane.b32.xlu0 %v239_v11, %s863_s22 }
  0x8d   : > { %v249_v13 = vpop.permute.xlu1 %248  ;;  %266 = vmatprep.subr.bf16.mxu0 %v239_v11  ;;  %751 = vmatprep.subr.bf16.mxu1 %v860_v0 }
  0x8e   : > { %267 = vmatpush1.bf16.msra.mxu0 %v238_v12  ;;  %v247_v14 = vpop.permute.xlu0 %246 }
  0x8f   : > { %v254_v15 = vsel %vm252_vm2, %v247_v14, %v249_v13 }
  0x90   : > { %358 = vrot.lane.b32.xlu0 %v238_v12, %s863_s22  ;;  %268 = vmatprep.subr.bf16.mxu0 %v254_v15 }
  0x91   : > { %v245_v16 = vpop.permute.xlu1 %244 }
  0x92   : > { %v253_v17 = vsel %vm252_vm2, %v245_v16, %v247_v14  ;;  %v251_v18 = vpop.permute.xlu0 %250 }
  0x93   : > { %269 = vmatpush1.bf16.msra.mxu0 %v253_v17  ;;  %372 = vrot.lane.b32.xlu1 %v251_v18, %s863_s22  ;;  %v255_v20 = vsel %vm252_vm2, %v249_v13, %v251_v18 }
  0x94   : > { %752 = vmatpush3.bf16.msra.mxu1 %v255_v20  ;;  %368 = vrot.lane.b32.xlu0 %v254_v15, %s863_s22 }
  0x95   : > { %v355_v21 = vpop.permute.xlu1 %354  ;;  %757 = vmatprep.subr.bf16.mxu1 %v860_v0 }
  0x96   : > { %721 = vmatmul.mubr.msk.bf16.vlgmr.msra.gmra.mrb[0].mxu0 %vm260_vm3, %v259_v19  ;;  %v353_v22 = vpop.permute.xlu0 %352 }
  0x97   : > { %428 = vmatprep.mubr.bf16.mxu0 %v865_v5  ;;  %362 = vrot.lane.b32.xlu1 %v240_v10, %s863_s22  ;;  %v376_v23 = vsel %vm374_vm4, %v353_v22, %v355_v21 }
  0x98   : > { %754 = vmatmul.mubr.msk.bf16.vlgmr.msra.gmra.mrb[0].mxu1 %vm260_vm3, %v259_v19  ;;  %366 = vrot.lane.b32.xlu0 %v253_v17, %s863_s22 }
  0x99   : > { %v357_v24 = vpop.permute.xlu1 %356  ;;  %396 = vmatprep.subr.bf16.mxu0 %v376_v23  ;;  %763 = vmatprep.mubr.msk.bf16.mxu1 %vm866_vm0, %v860_v0 }
  0x9a   : > { %v377_v25 = vsel %vm374_vm4, %v355_v21, %v357_v24  ;;  %v351_v26 = vpop.permute.xlu0 %350 }
  0x9b   : > { %758 = vmatpush3.bf16.msra.mxu1 %v377_v25  ;;  %370 = vrot.lane.b32.xlu1 %v255_v20, %s863_s22  ;;  %v375_v27 = vsel %vm374_vm4, %v351_v26, %v353_v22 }
  0x9c   : > { %759 = vmatprep.subr.bf16.mxu1 %v860_v0  ;;  %492 = vrot.lane.b32.xlu0 %v239_v11, %s864_s23 }
  0x9d   : > { %397 = vmatpush1.bf16.msra.mxu0 %v375_v27  ;;  %v487_v30 = vpop.permute.xlu1 %486 }
  0x9e   : > { %v485_v29 = vpop.permute.xlu0 %484 }
  0x9f   : > { %496 = vrot.lane.b32.xlu1 %v236_v6, %s864_s23  ;;  %v508_v49 = vsel %vm506_vm5, %v485_v29, %v487_v30 }
  0xa0   : > { %490 = vrot.lane.b32.xlu0 %v238_v12, %s864_s23 }
  0xa1   : > { %v489_v32 = vpop.permute.xlu1 %488 }
  0xa2   : > { %v483_v31 = vpop.permute.xlu0 %482  ;;  %v509_v51 = vsel %vm506_vm5, %v487_v30, %v489_v32 }
  0xa3   : > { %494 = vrot.lane.b32.xlu1 %v240_v10, %s864_s23  ;;  %v507_v53 = vsel %vm506_vm5, %v483_v31, %v485_v29 }
  0xa4   : > { %500 = vrot.lane.b32.xlu0 %v254_v15, %s864_s23 }
  0xa7   : > { %502 = vrot.lane.b32.xlu1 %v255_v20, %s864_s23 }
  0xa8   : > { %498 = vrot.lane.b32.xlu0 %v253_v17, %s864_s23 }
  0xab   : > { %504 = vrot.lane.b32.xlu1 %v251_v18, %s864_s23 }
  0xac   : > { %198 = vperm.xlu0 %829, %v195_v28  }
  0xf8   : > { %v365_v34 = vpop.permute.xlu1 %364 }
  0xfe   : > { %v361_v33 = vpop.permute.xlu0 %360 }
 0x102   : > { %v359_v35 = vpop.permute.xlu0 %358 }
 0x103   : > { %v378_v42 = vsel %vm374_vm4, %v359_v35, %v361_v33 }
 0x105   : > { %v373_v36 = vpop.permute.xlu1 %372 }
 0x106   : > { %v369_v37 = vpop.permute.xlu0 %368 }
 0x109   : > { %v363_v38 = vpop.permute.xlu1 %362 }
 0x10a   : > { %v380_v39 = vsel %vm374_vm4, %v363_v38, %v365_v34  ;;  %v367_v40 = vpop.permute.xlu0 %366  ;;  %v379_v41 = vsel %vm374_vm4, %v361_v33, %v363_v38 }
 0x10b   : > { %398 = vmatprep.subr.bf16.mxu0 %v379_v41  ;;  %760 = vmatpush3.bf16.msra.mxu1 %v380_v39  ;;  %v381_v47 = vsel %vm374_vm4, %v367_v40, %v369_v37 }
 0x10c   : > { %399 = vmatpush1.bf16.msra.mxu0 %v378_v42  ;;  %761 = vmatprep.subr.bf16.mxu1 %v860_v0 }
 0x10d   : > { %v371_v43 = vpop.permute.xlu1 %370 }
 0x10e   : > { %v383_v44 = vsel %vm374_vm4, %v371_v43, %v373_v36  ;;  %v493_v45 = vpop.permute.xlu0 %492  ;;  %v382_v46 = vsel %vm374_vm4, %v369_v37, %v371_v43 }
 0x10f   : > { %400 = vmatprep.subr.bf16.mxu0 %v382_v46  ;;  %762 = vmatpush3.bf16.msra.mxu1 %v383_v44 }
 0x110   : > { %401 = vmatpush1.bf16.msra.mxu0 %v381_v47  ;;  %767 = vmatprep.subr.bf16.mxu1 %v860_v0 }
 0x111   : > { %v497_v50 = vpop.permute.xlu1 %496  ;;  %528 = vmatprep.subr.bf16.mxu0 %v508_v49 }
 0x112   : > { %v491_v52 = vpop.permute.xlu0 %490  ;;  %764 = vmatmul.mubr.msk.bf16.vlgmr.msra.gmra.mrb[0].mxu1 %vm260_vm3, %v723_v48 }
 0x113   : > { %724 = vmatmul.mubr.msk.bf16.vlgmr.msra.gmra.mrb[0].mxu0 %vm260_vm3, %v723_v48  ;;  %768 = vmatpush3.bf16.msra.mxu1 %v509_v51  ;;  %v510_v58 = vsel %vm506_vm5, %v491_v52, %v493_v45 }
 0x114   : > { %529 = vmatpush1.bf16.msra.mxu0 %v507_v53  ;;  %769 = vmatprep.subr.bf16.mxu1 %v860_v0 }
 0x115   : > { %v495_v54 = vpop.permute.xlu1 %494  ;;  %560 = vmatprep.mubr.bf16.mxu0 %v865_v5  ;;  %773 = vmatprep.mubr.msk.bf16.mxu1 %vm866_vm0, %v860_v0 }
 0x116   : > { %v512_v55 = vsel %vm506_vm5, %v495_v54, %v497_v50  ;;  %v501_v56 = vpop.permute.xlu0 %500  ;;  %v511_v57 = vsel %vm506_vm5, %v493_v45, %v495_v54 }
 0x117   : > { %530 = vmatprep.subr.bf16.mxu0 %v511_v57  ;;  %770 = vmatpush3.bf16.msra.mxu1 %v512_v55 }
 0x118   : > { %531 = vmatpush1.bf16.msra.mxu0 %v510_v58  ;;  %771 = vmatprep.subr.bf16.mxu1 %v860_v0 }
 0x119   : > { %v503_v59 = vpop.permute.xlu1 %502 }
 0x11a   : > { %v499_v60 = vpop.permute.xlu0 %498  ;;  %v514_v61 = vsel %vm506_vm5, %v501_v56, %v503_v59 }
 0x11b   : > { %v513_v62 = vsel %vm506_vm5, %v499_v60, %v501_v56  ;;  %532 = vmatprep.subr.bf16.mxu0 %v514_v61 }
 0x11c   : > { %533 = vmatpush1.bf16.msra.mxu0 %v513_v62 }
 0x11d   : > { %v505_v1 = vpop.permute.xlu1 %504 }
 0x11e   : > { %v515_v2 = vsel %vm506_vm5, %v503_v59, %v505_v1 }
 0x11f   : > { %727 = vmatmul.mubr.msk.bf16.vlgmr.msra.gmra.mrb[0].mxu0 %vm260_vm3, %v726_v63  ;;  %772 = vmatpush3.bf16.msra.mxu1 %v515_v2 }
 0x122   : > { %774 = vmatmul.mubr.msk.bf16.vlgmr.msra.gmra.mrb[0].mxu1 %vm260_vm3, %v726_v63 }
 0x12b   : > { %v199_v0 = vpop.permute.xlu0 %198 }
 0x1f2   : > { %v562_v3 = vpop.f32.mrb[0].mxu0 }
 0x1f3   : > { %v777_v4 = vadd.f32 %v562_v3, %v199_v0  ;;  %v564_v5 = vpop.f32.mrb[1].mxu0 }
 0x1f4   : > { %v778_v6 = vadd.f32 %v564_v5, %v199_v0  ;;  %v566_v7 = vpop.f32.mrb[2].mxu0 }
 0x1f5   : > { %v567_v8 = vpop.f32.mrb[3].mxu0  ;;  %v603_v9 = vpop.f32.mrb[0].mxu1 }
 0x1f6   : > { %v733_v10 = vpack.c.bf16 %v778_v6, %v777_v4  ;;  %v779_v11 = vadd.f32 %v603_v9, %v199_v0  ;;  %v775_v12 = vpop.f32.mrb[1].mxu1 }
 0x1f7   : > { %v606_v13 = vpop.f32.mrb[2].mxu1 }
 0x1f8   : > { %v734_v14 = vpack.c.bf16 %v779_v11, %v779_v11  ;;  %625 = vst [vmem:[%s192_s8] sm:$0xff] %v733_v10  ;;  %v776_v15 = vpop.f32.mrb[3].mxu1 }
 0x1fa   : > { %626 = vst [vmem:[%s192_s8 + $0x8] sm:$0xf] %v734_v14 }
 0x1fb PF: > { %s13_s14 = sadd.s32 1, %s858_s14   ;;  %s1007_s12 = smov %s854_s13 }
 0x1fc   : > { %p10_p5 = scmp.ge.s32.totalorder %s13_s14, 4   ;;  %s1008_s13 = smov %s1010_s15 }
 0x1fe   :  { %12 = sbr.rel (!%p10_p5) target bundleno = 2 (0x2), region = 65 }

</bundles_post_ra>
